<compile_context>
chip_gen: v7x
topology: tpu7x:2x2x1
jax: 0.10.0
libtpu: 0.0.40
codegen_flags: <defaults>
</compile_context>

<pallas_src>
import jax
import jax.numpy as jnp
from jax import lax
from jax.experimental import pallas as pl
from jax.experimental.pallas import tpu as pltpu

EPS = 1e-8                # torch.nn.CosineSimilarity default eps
ONEHOT_TILE_B = 256       # ids per grid step for the resident-table path
PREGATHER_TILE_B = 512    # ids per grid step for the pre-gathered fallback
ONEHOT_MAX_ROWS = 4096    # row-count gate for the one-hot MXU gather


def _vmem_capacity_bytes():
    """Per-core VMEM capacity (generation-aware), with a safe default."""
    try:
        return int(pltpu.get_tpu_info().vmem_capacity_bytes)
    except Exception:
        return 128 * 1024 * 1024


def _round_up(x, m):
    return ((x + m - 1) // m) * m


def _cosine_from_cols(u, m):
    """u, m: (D, TB) float32 column-major embeddings -> (1, TB) cosine sim.

    torch semantics: dot / max(||u|| * ||m||, eps)."""
    dot = jnp.sum(u * m, axis=0, keepdims=True)
    nu = jnp.sqrt(jnp.sum(u * u, axis=0, keepdims=True))
    nm = jnp.sqrt(jnp.sum(m * m, axis=0, keepdims=True))
    return dot / jnp.maximum(nu * nm, EPS)


def _cosine_onehot_kernel(uid_ref, mid_ref, ut_ref, mt_ref, o_ref):
    # uid_ref / mid_ref: (1, TB) int32 id slabs
    # ut_ref / mt_ref:   full embedding tables resident in VMEM (single-buffered)
    # o_ref:             (1, TB) cosine similarities
    uid = uid_ref[...]
    mid = mid_ref[...]
    ut = ut_ref[...]                       # table dtype as-is (no per-step cast)
    mt = mt_ref[...]
    tb = uid.shape[1]

    # Embedding lookup as a one-hot matmul on the otherwise-idle MXU:
    #   gathered (D, TB) = table^T (D, N) @ one_hot (N, TB)
    # One-hot is built in the table's dtype (exact for 0/1) so the MXU runs at
    # its native rate for bf16 tables and no N*D f32 temp is materialized.
    oh_u = (lax.broadcasted_iota(jnp.int32, (ut.shape[0], tb), 0) == uid
            ).astype(ut.dtype)             # (Nu, TB)
    oh_m = (lax.broadcasted_iota(jnp.int32, (mt.shape[0], tb), 0) == mid
            ).astype(mt.dtype)             # (Nm, TB)
    u = lax.dot_general(ut, oh_u, (((0,), (0,)), ((), ())),
                        preferred_element_type=jnp.float32)   # (D, TB) f32
    m = lax.dot_general(mt, oh_m, (((0,), (0,)), ((), ())),
                        preferred_element_type=jnp.float32)   # (D, TB) f32
    o_ref[...] = _cosine_from_cols(u, m)


def _cosine_rows_kernel(u_ref, m_ref, o_ref):
    # u_ref / m_ref: (TB, D) pre-gathered embedding rows; o_ref: (TB, 1)
    u = u_ref[...].astype(jnp.float32)
    m = m_ref[...].astype(jnp.float32)
    dot = jnp.sum(u * m, axis=-1, keepdims=True)
    nu = jnp.sqrt(jnp.sum(u * u, axis=-1, keepdims=True))
    nm = jnp.sqrt(jnp.sum(m * m, axis=-1, keepdims=True))
    o_ref[...] = dot / jnp.maximum(nu * nm, EPS)


def _full_table_spec(shape, pipeline_mode):
    if pipeline_mode is None:
        return pl.BlockSpec(shape, lambda i: (0, 0))
    return pl.BlockSpec(shape, lambda i: (0, 0), pipeline_mode=pipeline_mode)


def matrix_completion_forward(user_table, movie_table, user_id, movie_id,
                              *, onehot_tile_b=ONEHOT_TILE_B,
                              pregather_tile_b=PREGATHER_TILE_B,
                              vmem_table_budget=None):
    """user_table: (num_users, D), movie_table: (num_movies, D),
    user_id/movie_id: (B,) int -> (B,) float32 cosine similarity."""
    B = int(user_id.shape[0])
    Nu, D = user_table.shape
    Nm = movie_table.shape[0]
    itemsize = jnp.dtype(user_table.dtype).itemsize
    vmem_cap = _vmem_capacity_bytes()

    if vmem_table_budget is None:
        # ~1/3 of per-core VMEM, capped: ~21 MiB on v7x (64 MiB/TC),
        # 40 MiB on v5e/v6e (128 MiB).
        vmem_table_budget = min(vmem_cap // 3, 40 * 1024 * 1024)

    uid = user_id.astype(jnp.int32)
    mid = movie_id.astype(jnp.int32)
    tables_bytes = (user_table.size + movie_table.size) * itemsize

    use_onehot = (tables_bytes <= vmem_table_budget
                  and max(Nu, Nm) <= ONEHOT_MAX_ROWS)

    if use_onehot:
        # ---------------- Path A: resident tables + one-hot MXU gather -------
        tile_b = min(onehot_tile_b, _round_up(max(B, 1), 128))
        num_tiles = pl.cdiv(B, tile_b)
        Bp = num_tiles * tile_b
        pad = Bp - B
        if pad:
            uid = jnp.concatenate([uid, jnp.zeros((pad,), jnp.int32)])
            mid = jnp.concatenate([mid, jnp.zeros((pad,), jnp.int32)])
        uid2 = uid.reshape(1, Bp)
        mid2 = mid.reshape(1, Bp)

        cost = pl.CostEstimate(
            flops=int(num_tiles * (2 * (Nu + Nm) * D * tile_b + 8 * D * tile_b)),
            transcendentals=int(2 * Bp),
            bytes_accessed=int(tables_bytes + 3 * Bp * 4))

        def run(table_mode):
            table_buffers = 1 if table_mode is not None else 2
            # Derived from actual buffer sizes: resident tables + id/out blocks
            # (double-buffered) + one-hot / gathered temporaries + slack.
            vmem_limit = (table_buffers * tables_bytes
                          + 2 * 2 * tile_b * 4          # two int32 id inputs
                          + 2 * tile_b * 4              # f32 output block
                          + (Nu + Nm) * tile_b * itemsize   # one-hot masks
                          + 2 * D * tile_b * 4          # gathered (D, TB) f32
                          + (4 << 20))                  # compiler slack
            vmem_limit = max(vmem_limit, 16 << 20)
            vmem_limit = int(min(vmem_limit, (vmem_cap * 3) // 4))
            return pl.pallas_call(
                _cosine_onehot_kernel,
                out_shape=jax.ShapeDtypeStruct((1, Bp), jnp.float32),
                grid_spec=pl.GridSpec(
                    grid=(num_tiles,),
                    in_specs=[
                        pl.BlockSpec((1, tile_b), lambda i: (0, i)),
                        pl.BlockSpec((1, tile_b), lambda i: (0, i)),
                        _full_table_spec(user_table.shape, table_mode),
                        _full_table_spec(movie_table.shape, table_mode),
                    ],
                    out_specs=pl.BlockSpec((1, tile_b), lambda i: (0, i)),
                ),
                compiler_params=pltpu.CompilerParams(
                    dimension_semantics=("parallel",),
                    vmem_limit_bytes=vmem_limit),
                cost_estimate=cost,
            )(uid2, mid2, user_table, movie_table)

        try:
            # Constant index_map -> single-buffer the resident tables.
            out = run(pl.Buffered(1))
        except Exception:
            # Fallback for jax versions without single-buffer pipeline_mode.
            out = run(None)
        return out.reshape(-1)[:B]

    # -------------------- Path B: large-table fallback ----------------------
    # Pre-gather the needed rows with XLA (tables stay in HBM); feed them
    # row-major (no host-side transpose: saves a full HBM read+write of the
    # gathered arrays) and reduce along the embedding axis in-kernel.
    # TODO(synk): for very large tables an in-kernel gather (scalar-prefetched
    # ids + manual make_async_copy row fetches) would avoid materializing the
    # gathered (B, D) arrays in HBM entirely.
    tile_b = min(pregather_tile_b, _round_up(max(B, 1), 128))
    num_tiles = pl.cdiv(B, tile_b)
    Bp = num_tiles * tile_b
    pad = Bp - B
    if pad:
        uid = jnp.concatenate([uid, jnp.zeros((pad,), jnp.int32)])
        mid = jnp.concatenate([mid, jnp.zeros((pad,), jnp.int32)])

    u_rows = jnp.take(user_table, uid, axis=0)    # (Bp, D)
    m_rows = jnp.take(movie_table, mid, axis=0)   # (Bp, D)

    block_bytes = tile_b * D * itemsize
    vmem_limit = 2 * 2 * block_bytes + 2 * tile_b * 4 + (2 << 20)
    vmem_limit = int(min(max(vmem_limit, 8 << 20), (vmem_cap * 3) // 4))
    cost = pl.CostEstimate(
        flops=int(8 * Bp * D),
        transcendentals=int(2 * Bp),
        bytes_accessed=int(2 * Bp * D * itemsize + Bp * 4))

    out = pl.pallas_call(
        _cosine_rows_kernel,
        out_shape=jax.ShapeDtypeStruct((Bp, 1), jnp.float32),
        grid_spec=pl.GridSpec(
            grid=(num_tiles,),
            in_specs=[pl.BlockSpec((tile_b, D), lambda i: (i, 0)),
                      pl.BlockSpec((tile_b, D), lambda i: (i, 0))],
            out_specs=pl.BlockSpec((tile_b, 1), lambda i: (i, 0)),
        ),
        compiler_params=pltpu.CompilerParams(
            dimension_semantics=("parallel",),
            vmem_limit_bytes=vmem_limit),
        cost_estimate=cost,
    )(u_rows, m_rows)
    return out.reshape(-1)[:B]


def _reference_forward(user_table, movie_table, user_id, movie_id):
    # Mirrors torch.nn.CosineSimilarity: dot / max(||u|| * ||m||, eps)
    u = user_table[user_id]
    m = movie_table[movie_id]
    dot = jnp.sum(u * m, axis=1)
    denom = jnp.maximum(jnp.linalg.norm(u, axis=1)
                        * jnp.linalg.norm(m, axis=1), EPS)
    return dot / denom


if __name__ == "__main__":
    num_users = 32
    num_movies = 48
    embedding_dim = 128
    batch = 8

    key = jax.random.PRNGKey(0)
    k_user, k_movie, k_uid, k_mid, k_uid2, k_mid2 = jax.random.split(key, 6)

    # nn.Embedding default init: N(0, 1)
    user_table = jax.random.normal(k_user, (num_users, embedding_dim),
                                   dtype=jnp.float32)
    movie_table = jax.random.normal(k_movie, (num_movies, embedding_dim),
                                    dtype=jnp.float32)

    user_id = jax.random.randint(k_uid, (batch,), 0, num_users, dtype=jnp.int32)
    movie_id = jax.random.randint(k_mid, (batch,), 0, num_movies,
                                  dtype=jnp.int32)

    ref = _reference_forward(user_table, movie_table, user_id, movie_id)

    # Path A: tables resident (single-buffered) in VMEM, one-hot MXU gather.
    sim = jax.block_until_ready(
        matrix_completion_forward(user_table, movie_table, user_id, movie_id))
    assert sim.shape == (batch,)
    assert jnp.allclose(sim, ref, atol=1e-5, rtol=1e-5), (sim, ref)

    # Path B: force the large-table fallback (row-major pre-gather, 512-wide tiles).
    sim_b = jax.block_until_ready(
        matrix_completion_forward(user_table, movie_table, user_id, movie_id,
                                  vmem_table_budget=0))
    assert sim_b.shape == (batch,)
    assert jnp.allclose(sim_b, ref, atol=1e-5, rtol=1e-5), (sim_b, ref)

    # Multi-tile + padding check (batch not a multiple of the tile width).
    batch2 = 300
    user_id2 = jax.random.randint(k_uid2, (batch2,), 0, num_users,
                                  dtype=jnp.int32)
    movie_id2 = jax.random.randint(k_mid2, (batch2,), 0, num_movies,
                                   dtype=jnp.int32)
    ref2 = _reference_forward(user_table, movie_table, user_id2, movie_id2)
    sim2 = jax.block_until_ready(
        matrix_completion_forward(user_table, movie_table, user_id2, movie_id2))
    assert sim2.shape == (batch2,)
    assert jnp.allclose(sim2, ref2, atol=1e-5, rtol=1e-5)

    print("KERNEL_OK")
</pallas_src>

<mosaic_0001>
module attributes {stable_mosaic.version = 11 : i64} {
  func.func @_cosine_onehot_kernel(%arg0: i32, %arg1: memref<1x128xi32, #tpu.memory_space<vmem>>, %arg2: memref<1x128xi32, #tpu.memory_space<vmem>>, %arg3: memref<32x128xf32, #tpu.memory_space<vmem>>, %arg4: memref<48x128xf32, #tpu.memory_space<vmem>>, %arg5: memref<1x128xf32, #tpu.memory_space<vmem>>) attributes {dimension_semantics = [#tpu.dimension_semantics<parallel>], iteration_bounds = array<i64: 1>, scalar_prefetch = 0 : i64, scratch_operands = 0 : i64, tpu.core_type = #tpu.core_type<tc>, window_params = [{transform_indices = @transform_0, window_bounds = array<i64: 1, 128>}, {transform_indices = @transform_1, window_bounds = array<i64: 1, 128>}, {pipeline_mode = #tpu.pipeline_mode<synchronous>, transform_indices = @transform_2, window_bounds = array<i64: 32, 128>}, {pipeline_mode = #tpu.pipeline_mode<synchronous>, transform_indices = @transform_3, window_bounds = array<i64: 48, 128>}, {transform_indices = @transform_4, window_bounds = array<i64: 1, 128>}]} {
    %c0 = arith.constant 0 : index
    %c0_0 = arith.constant 0 : index
    %0 = vector.load %arg1[%c0, %c0_0] : memref<1x128xi32, #tpu.memory_space<vmem>>, vector<1x128xi32>
    %c0_1 = arith.constant 0 : index
    %c0_2 = arith.constant 0 : index
    %1 = vector.load %arg2[%c0_1, %c0_2] : memref<1x128xi32, #tpu.memory_space<vmem>>, vector<1x128xi32>
    %c0_3 = arith.constant 0 : index
    %c0_4 = arith.constant 0 : index
    %2 = vector.load %arg3[%c0_3, %c0_4] : memref<32x128xf32, #tpu.memory_space<vmem>>, vector<32x128xf32>
    %c0_5 = arith.constant 0 : index
    %c0_6 = arith.constant 0 : index
    %3 = vector.load %arg4[%c0_5, %c0_6] : memref<48x128xf32, #tpu.memory_space<vmem>>, vector<48x128xf32>
    %4 = tpu.iota {dimensions = array<i32: 0>} : vector<32x128xi32>
    %5 = vector.broadcast %0 : vector<1x128xi32> to vector<32x128xi32>
    %6 = arith.cmpi eq, %4, %5 : vector<32x128xi32>
    %7 = arith.extui %6 : vector<32x128xi1> to vector<32x128xi32>
    %8 = arith.sitofp %7 : vector<32x128xi32> to vector<32x128xf32>
    %9 = tpu.iota {dimensions = array<i32: 0>} : vector<48x128xi32>
    %10 = vector.broadcast %1 : vector<1x128xi32> to vector<48x128xi32>
    %11 = arith.cmpi eq, %9, %10 : vector<48x128xi32>
    %12 = arith.extui %11 : vector<48x128xi1> to vector<48x128xi32>
    %13 = arith.sitofp %12 : vector<48x128xi32> to vector<48x128xf32>
    %cst = arith.constant dense<0.000000e+00> : vector<128x128xf32>
    %14 = tpu.matmul %2, %8, %cst {dimension_numbers = #tpu.dot_dimension_numbers<[0], [0], [1], [1], [0, 1, 1, 1], [], []>} : vector<32x128xf32>, vector<32x128xf32>, vector<128x128xf32> -> vector<128x128xf32>
    %cst_7 = arith.constant dense<0.000000e+00> : vector<128x128xf32>
    %15 = tpu.matmul %3, %13, %cst_7 {dimension_numbers = #tpu.dot_dimension_numbers<[0], [0], [1], [1], [0, 1, 1, 1], [], []>} : vector<48x128xf32>, vector<48x128xf32>, vector<128x128xf32> -> vector<128x128xf32>
    %16 = arith.mulf %14, %15 : vector<128x128xf32>
    %cst_8 = arith.constant dense<0.000000e+00> : vector<128xf32>
    %17 = vector.multi_reduction <add>, %16, %cst_8 [0] : vector<128x128xf32> to vector<128xf32>
    %18 = vector.shape_cast %17 : vector<128xf32> to vector<1x128xf32>
    %19 = arith.mulf %14, %14 : vector<128x128xf32>
    %cst_9 = arith.constant dense<0.000000e+00> : vector<128xf32>
    %20 = vector.multi_reduction <add>, %19, %cst_9 [0] : vector<128x128xf32> to vector<128xf32>
    %21 = vector.shape_cast %20 : vector<128xf32> to vector<1x128xf32>
    %22 = math.sqrt %21 : vector<1x128xf32>
    %23 = arith.mulf %15, %15 : vector<128x128xf32>
    %cst_10 = arith.constant dense<0.000000e+00> : vector<128xf32>
    %24 = vector.multi_reduction <add>, %23, %cst_10 [0] : vector<128x128xf32> to vector<128xf32>
    %25 = vector.shape_cast %24 : vector<128xf32> to vector<1x128xf32>
    %26 = math.sqrt %25 : vector<1x128xf32>
    %27 = arith.mulf %22, %26 : vector<1x128xf32>
    %cst_11 = arith.constant 9.99999993E-9 : f32
    %28 = vector.broadcast %cst_11 : f32 to vector<1x128xf32>
    %29 = arith.maximumf %27, %28 : vector<1x128xf32>
    %30 = arith.divf %18, %29 : vector<1x128xf32>
    %c0_12 = arith.constant 0 : index
    %c0_13 = arith.constant 0 : index
    %31 = vector.load %arg5[%c0_12, %c0_13] : memref<1x128xf32, #tpu.memory_space<vmem>>, vector<1x128xf32>
    tpu.vector_store %arg5[%c0_12, %c0_13], %30 {strides = array<i32>} : memref<1x128xf32, #tpu.memory_space<vmem>>, vector<1x128xf32>,
    return
  }
  func.func @transform_0(%arg0: i32) -> (i32, i32) {
    %c0_i32 = arith.constant 0 : i32
    %c0_i32_0 = arith.constant 0 : i32
    return %c0_i32, %arg0 : i32, i32
  }
  func.func @transform_1(%arg0: i32) -> (i32, i32) {
    %c0_i32 = arith.constant 0 : i32
    %c0_i32_0 = arith.constant 0 : i32
    return %c0_i32, %arg0 : i32, i32
  }
  func.func @transform_2(%arg0: i32) -> (i32, i32) {
    %c0_i32 = arith.constant 0 : i32
    %c0_i32_0 = arith.constant 0 : i32
    %c0_i32_1 = arith.constant 0 : i32
    return %c0_i32, %c0_i32_0 : i32, i32
  }
  func.func @transform_3(%arg0: i32) -> (i32, i32) {
    %c0_i32 = arith.constant 0 : i32
    %c0_i32_0 = arith.constant 0 : i32
    %c0_i32_1 = arith.constant 0 : i32
    return %c0_i32, %c0_i32_0 : i32, i32
  }
  func.func @transform_4(%arg0: i32) -> (i32, i32) {
    %c0_i32 = arith.constant 0 : i32
    %c0_i32_0 = arith.constant 0 : i32
    return %c0_i32, %arg0 : i32, i32
  }
}

module attributes {stable_mosaic.version = 11 : i64} {
  func.func @_cosine_onehot_kernel(%arg0: i32, %arg1: memref<1x128xi32, #tpu.memory_space<vmem>>, %arg2: memref<1x128xi32, #tpu.memory_space<vmem>>, %arg3: memref<32x128xf32, #tpu.memory_space<vmem>>, %arg4: memref<48x128xf32, #tpu.memory_space<vmem>>, %arg5: memref<1x128xf32, #tpu.memory_space<vmem>>) attributes {dimension_semantics = [#tpu.dimension_semantics<parallel>], iteration_bounds = array<i64: 1>, scalar_prefetch = 0 : i64, scratch_operands = 0 : i64, tpu.core_type = #tpu.core_type<tc>, window_params = [{transform_indices = @transform_0, window_bounds = array<i64: 1, 128>}, {transform_indices = @transform_1, window_bounds = array<i64: 1, 128>}, {pipeline_mode = #tpu.pipeline_mode<synchronous>, transform_indices = @transform_2, window_bounds = array<i64: 32, 128>}, {pipeline_mode = #tpu.pipeline_mode<synchronous>, transform_indices = @transform_3, window_bounds = array<i64: 48, 128>}, {transform_indices = @transform_4, window_bounds = array<i64: 1, 128>}]} {
    %c0 = arith.constant 0 : index
    %c0_0 = arith.constant 0 : index
    %0 = vector.load %arg1[%c0, %c0_0] : memref<1x128xi32, #tpu.memory_space<vmem>>, vector<1x128xi32>
    %c0_1 = arith.constant 0 : index
    %c0_2 = arith.constant 0 : index
    %1 = vector.load %arg2[%c0_1, %c0_2] : memref<1x128xi32, #tpu.memory_space<vmem>>, vector<1x128xi32>
    %c0_3 = arith.constant 0 : index
    %c0_4 = arith.constant 0 : index
    %2 = vector.load %arg3[%c0_3, %c0_4] : memref<32x128xf32, #tpu.memory_space<vmem>>, vector<32x128xf32>
    %c0_5 = arith.constant 0 : index
    %c0_6 = arith.constant 0 : index
    %3 = vector.load %arg4[%c0_5, %c0_6] : memref<48x128xf32, #tpu.memory_space<vmem>>, vector<48x128xf32>
    %4 = tpu.iota {dimensions = array<i32: 0>} : vector<32x128xi32>
    %5 = vector.broadcast %0 : vector<1x128xi32> to vector<32x128xi32>
    %6 = arith.cmpi eq, %4, %5 : vector<32x128xi32>
    %7 = arith.extui %6 : vector<32x128xi1> to vector<32x128xi32>
    %8 = arith.sitofp %7 : vector<32x128xi32> to vector<32x128xf32>
    %9 = tpu.iota {dimensions = array<i32: 0>} : vector<48x128xi32>
    %10 = vector.broadcast %1 : vector<1x128xi32> to vector<48x128xi32>
    %11 = arith.cmpi eq, %9, %10 : vector<48x128xi32>
    %12 = arith.extui %11 : vector<48x128xi1> to vector<48x128xi32>
    %13 = arith.sitofp %12 : vector<48x128xi32> to vector<48x128xf32>
    %cst = arith.constant dense<0.000000e+00> : vector<128x128xf32>
    %14 = tpu.matmul %2, %8, %cst {dimension_numbers = #tpu.dot_dimension_numbers<[0], [0], [1], [1], [0, 1, 1, 1], [], []>} : vector<32x128xf32>, vector<32x128xf32>, vector<128x128xf32> -> vector<128x128xf32>
    %cst_7 = arith.constant dense<0.000000e+00> : vector<128x128xf32>
    %15 = tpu.matmul %3, %13, %cst_7 {dimension_numbers = #tpu.dot_dimension_numbers<[0], [0], [1], [1], [0, 1, 1, 1], [], []>} : vector<48x128xf32>, vector<48x128xf32>, vector<128x128xf32> -> vector<128x128xf32>
    %16 = arith.mulf %14, %15 : vector<128x128xf32>
    %cst_8 = arith.constant dense<0.000000e+00> : vector<128xf32>
    %17 = vector.multi_reduction <add>, %16, %cst_8 [0] : vector<128x128xf32> to vector<128xf32>
    %18 = vector.shape_cast %17 : vector<128xf32> to vector<1x128xf32>
    %19 = arith.mulf %14, %14 : vector<128x128xf32>
    %cst_9 = arith.constant dense<0.000000e+00> : vector<128xf32>
    %20 = vector.multi_reduction <add>, %19, %cst_9 [0] : vector<128x128xf32> to vector<128xf32>
    %21 = vector.shape_cast %20 : vector<128xf32> to vector<1x128xf32>
    %22 = math.sqrt %21 : vector<1x128xf32>
    %23 = arith.mulf %15, %15 : vector<128x128xf32>
    %cst_10 = arith.constant dense<0.000000e+00> : vector<128xf32>
    %24 = vector.multi_reduction <add>, %23, %cst_10 [0] : vector<128x128xf32> to vector<128xf32>
    %25 = vector.shape_cast %24 : vector<128xf32> to vector<1x128xf32>
    %26 = math.sqrt %25 : vector<1x128xf32>
    %27 = arith.mulf %22, %26 : vector<1x128xf32>
    %cst_11 = arith.constant 9.99999993E-9 : f32
    %28 = vector.broadcast %cst_11 : f32 to vector<1x128xf32>
    %29 = arith.maximumf %27, %28 : vector<1x128xf32>
    %30 = arith.divf %18, %29 : vector<1x128xf32>
    %c0_12 = arith.constant 0 : index
    %c0_13 = arith.constant 0 : index
    %31 = vector.load %arg5[%c0_12, %c0_13] : memref<1x128xf32, #tpu.memory_space<vmem>>, vector<1x128xf32>
    tpu.vector_store %arg5[%c0_12, %c0_13], %30 {strides = array<i32>} : memref<1x128xf32, #tpu.memory_space<vmem>>, vector<1x128xf32>,
    return
  }
  func.func @transform_0(%arg0: i32) -> (i32, i32) {
    %c0_i32 = arith.constant 0 : i32
    %c0_i32_0 = arith.constant 0 : i32
    return %c0_i32, %arg0 : i32, i32
  }
  func.func @transform_1(%arg0: i32) -> (i32, i32) {
    %c0_i32 = arith.constant 0 : i32
    %c0_i32_0 = arith.constant 0 : i32
    return %c0_i32, %arg0 : i32, i32
  }
  func.func @transform_2(%arg0: i32) -> (i32, i32) {
    %c0_i32 = arith.constant 0 : i32
    %c0_i32_0 = arith.constant 0 : i32
    %c0_i32_1 = arith.constant 0 : i32
    return %c0_i32, %c0_i32_0 : i32, i32
  }
  func.func @transform_3(%arg0: i32) -> (i32, i32) {
    %c0_i32 = arith.constant 0 : i32
    %c0_i32_0 = arith.constant 0 : i32
    %c0_i32_1 = arith.constant 0 : i32
    return %c0_i32, %c0_i32_0 : i32, i32
  }
  func.func @transform_4(%arg0: i32) -> (i32, i32) {
    %c0_i32 = arith.constant 0 : i32
    %c0_i32_0 = arith.constant 0 : i32
    return %c0_i32, %arg0 : i32, i32
  }
}

</mosaic_0001>

<bundles_post_ra>
// kernel: tpu_custom_call.1
= control target key start
LH: loop header
LB: loop body
LE: loop exit
PB: predicated region body
PF: predicated region fallthrough
CT: control target
= control target key end

     0   :  { %9 = vsyncpa [#allocation3], 0  ;;  %s1125_s0 = inlined_call_operand.hbm [shape: s32[1,128], index: 0, kind: input, shape index: {}]   ;;  %s1126_s1 = inlined_call_operand.vmem [shape: s32[1,128], index: 1, kind: input, shape index: {}]   ;;  %s1127_s2 = inlined_call_operand.hbm [shape: f32[32,128], index: 2, kind: input, shape index: {}]   ;;  %s1128_s3 = inlined_call_operand.hbm [shape: f32[48,128], index: 3, kind: input, shape index: {}]   ;;  %s1129_s4 = inlined_call_operand.hbm [shape: f32[1,128], index: 4, kind: output, shape index: {}]  }
   0x1   :  { %10 = vsyncpa [#allocation6], 0 }
   0x2   :  { %11 = vsyncpa [#allocation4], 0  ;;  %s1004_s15 = smov [#allocation5]   ;;  %s910_s19 = scalar_lea.hbm %s1127_s2, 512 }
   0x3   :  { %s29_s16 = sshll.u32 %s1004_s15, 4  ;;  %p911_p0 = scmp.ne.s32.totalorder %s1127_s2, %s910_s19  ;;  %s30_s16 = int_to_ptr.vmem [resolvable:$true] %s29_s16 }
   0x4   :  { %p914_p1 = scmp.lt.u32.totalorder %s910_s19, %s1127_s2 }
   0x6   :  { %p916_p2 = pnand %p914_p1, %p911_p0 }
   0x8   :  { %919 = shalt.err (!%p916_p2)
}
   0x9   :  { %s920_s24 = scalar_lea.vmem %s30_s16, 512  ;;  %p925_p4 = scmp.lt.s32.totalorder %s30_s16, %s30_s16 }
   0xa   :  { %p921_p3 = scmp.ne.s32.totalorder %s30_s16, %s920_s24  ;;  %p926_p5 = scmp.lt.s32.totalorder %s920_s24, %s920_s24 }
   0xc   :  { %p927_p6 = por %p926_p5, %p925_p4 }
   0xe   :  { %p928_p7 = pnand %p927_p6, %p921_p3 }
  0x10   :  { %931 = shalt.err (!%p928_p7)
}
  0x11   :  { %s1005_s25 = smov 128   ;;  %s1006_s26 = smov 8  }
  0x12   :  { %35 = dma.hbm_to_vmem [thread:$0]  %s1127_s2, 512, %s30_s16, [#allocation6], %s1005_s25, %s1005_s25, %s1006_s26  }
  0x13   :  { %s1007_s29 = smov [#allocation2]   ;;  %s1008_s5 = smov [#allocation7]  }
  0x14   :  { %s18_s30 = sshll.u32 %s1007_s29, 4  ;;  %s41_s6 = sshll.u32 %s1008_s5, 4  ;;  %s19_s30 = int_to_ptr.vmem [resolvable:$true] %s18_s30  ;;  %s42_s6 = int_to_ptr.vmem [resolvable:$true] %s41_s6 }
  0x15   :  { %s932_s9 = scalar_lea.hbm %s1125_s0, 16 }
  0x16   :  { %p933_p8 = scmp.ne.s32.totalorder %s1125_s0, %s932_s9  ;;  %p936_p9 = scmp.lt.u32.totalorder %s932_s9, %s1125_s0 }
  0x18   :  { %p938_p10 = pnand %p936_p9, %p933_p8 }
  0x1a   :  { %941 = shalt.err (!%p938_p10)
}
  0x1b   :  { %s942_s2 = scalar_lea.vmem %s19_s30, 16  ;;  %s946_s14 = scalar_lea.vmem %s19_s30, 32 }
  0x1c   :  { %p943_p11 = scmp.ne.s32.totalorder %s19_s30, %s942_s2  ;;  %p947_p12 = scmp.lt.s32.totalorder %s19_s30, %s19_s30 }
  0x1d   :  { %p948_p13 = scmp.lt.s32.totalorder %s946_s14, %s942_s2 }
  0x1f   :  { %p949_p0 = por %p948_p13, %p947_p12 }
  0x21   :  { %p950_p1 = pnand %p949_p0, %p943_p11 }
  0x23   :  { %953 = shalt.err (!%p950_p1)
}
  0x24   :  { %21 = dma.hbm_to_vmem [thread:$0]  %s1125_s0, 16, %s19_s30, [#allocation3]  }
  0x25   :  { %s954_s19 = scalar_lea.hbm %s1128_s3, 768 }
  0x26   :  { %p955_p2 = scmp.ne.s32.totalorder %s1128_s3, %s954_s19  ;;  %p958_p3 = scmp.lt.u32.totalorder %s954_s19, %s1128_s3 }
  0x28   :  { %p960_p4 = pnand %p958_p3, %p955_p2 }
  0x2a   :  { %963 = shalt.err (!%p960_p4)
}
  0x2b   :  { %s964_s24 = scalar_lea.vmem %s42_s6, 768  ;;  %p969_p6 = scmp.lt.s32.totalorder %s42_s6, %s42_s6 }
  0x2c   :  { %p965_p5 = scmp.ne.s32.totalorder %s42_s6, %s964_s24  ;;  %p970_p7 = scmp.lt.s32.totalorder %s964_s24, %s964_s24 }
  0x2e   :  { %p971_p8 = por %p970_p7, %p969_p6 }
  0x30   :  { %p972_p9 = pnand %p971_p8, %p965_p5 }
  0x32   :  { %975 = shalt.err (!%p972_p9)
}
  0x33   :  { %47 = dma.hbm_to_vmem [thread:$0]  %s1128_s3, 768, %s42_s6, [#allocation6], %s1005_s25, %s1005_s25, %s1006_s26  }
  0x34   :  { %998 = dma.done.wait [#allocation3], 16  }
  0x35   :  { %999 = vsyncadd [#allocation3], 4294967280 }
  0x36   :  { %1000 = dma.done.wait [#allocation6], 1280  }
  0x37   :  { %1001 = vsyncadd [#allocation6], 4294966016  ;;  %v69_v0 = vlaneseq  ;;  %v63_v2 = vld [vmem:[#allocation7] sm:$0xff]  ;;  %v64_v7 = vld [vmem:[#allocation7 + $0x8] sm:$0xff]  ;;  %v1009_v15 = vmov 1.0|1.0  }
  0x38   :  { %v59_v3 = vld [vmem:[#allocation5] sm:$0xff]  ;;  %340 = vxpose.xlu1.b32.start [1/6] (short) %v63_v2, 128  ;;  %v60_v8 = vld [vmem:[#allocation5 + $0x8] sm:$0xff]  ;;  %v717_v11 = vld [vmem:[%s1126_s1] ss:$0 sm:$0xff]  ;;  %vm146_vm15 = vcmask 261120   ;;  %s1010_s1 = smov [#allocation8]  }
  0x39   :  { %v70_v1 = vshrl.u32 %v69_v0, 7  ;;  %114 = vxpose.xlu0.b32.start [1/4] (short) %v59_v3, 128  ;;  %v712_v12 = vld [vmem:[#allocation2] ss:$0 sm:$0xff]  ;;  %v65_v13 = vld [vmem:[#allocation7 + $0x10] sm:$0xff]  ;;  %v67_v18 = vld [vmem:[#allocation7 + $0x20] sm:$0xff]  ;;  %s702_s3 = sshll.u32 %s1010_s1, 4  ;;  %s703_s3 = int_to_ptr.vmem [resolvable:$true] %s702_s3 }
  0x3a   :  { %v61_v14 = vld [vmem:[#allocation5 + $0x10] sm:$0xff]  ;;  %v66_v16 = vld [vmem:[#allocation7 + $0x18] sm:$0xff]  ;;  %v68_v19 = vld [vmem:[#allocation7 + $0x28] sm:$0xff]  ;;  %s976_s25 = scalar_lea.vmem %s703_s3, 16  ;;  %s980_s26 = scalar_lea.vmem %s703_s3, 32 }
  0x3b   :  { %v71_v4 = vadd.s32 8, %v70_v1  ;;  %v72_v5 = vadd.s32 16, %v70_v1  ;;  %v73_v6 = vadd.s32 24, %v70_v1  ;;  %v90_v9 = vadd.s32 32, %v70_v1  ;;  %v62_v17 = vld [vmem:[#allocation5 + $0x18] sm:$0xff]  ;;  %p977_p10 = scmp.ne.s32.totalorder %s703_s3, %s976_s25  ;;  %p981_p11 = scmp.lt.s32.totalorder %s703_s3, %s703_s3 }
  0x3c   :  { %v91_v10 = vadd.s32 40, %v70_v1  ;;  %vm96_vm0 = vcmp.eq.s32.totalorder %v70_v1, %v717_v11  ;;  %vm78_vm2 = vcmp.eq.s32.totalorder %v70_v1, %v712_v12  ;;  %341 = vxpose.xlu1.b32.cont [2/6] (short) %v64_v7, 128  ;;  %p982_p12 = scmp.lt.s32.totalorder %s980_s26, %s976_s25 }
  0x3d   :  { %vm97_vm1 = vcmp.eq.s32.totalorder %v71_v4, %v717_v11  ;;  %vm79_vm3 = vcmp.eq.s32.totalorder %v71_v4, %v712_v12  ;;  %115 = vxpose.xlu0.b32.cont [2/4] (short) %v60_v8, 128  ;;  %vm98_vm5 = vcmp.eq.s32.totalorder %v72_v5, %v717_v11  ;;  %vm99_vm6 = vcmp.eq.s32.totalorder %v73_v6, %v717_v11 }
  0x3e   :  { %vm884_vm4 = vmpackc.low %vm97_vm1, %vm96_vm0  ;;  %vm80_vm7 = vcmp.eq.s32.totalorder %v72_v5, %v712_v12  ;;  %vm81_vm9 = vcmp.eq.s32.totalorder %v73_v6, %v712_v12  ;;  %vm100_vm10 = vcmp.eq.s32.totalorder %v90_v9, %v717_v11  ;;  %vm101_vm11 = vcmp.eq.s32.totalorder %v91_v10, %v717_v11  ;;  %p983_p13 = por %p982_p12, %p981_p11 }
  0x3f   :  { %885 = vmatprep.subr.msk.bf16.mxu1 %vm884_vm4, %v1009_v15  ;;  %vm876_vm8 = vmpackc.low %vm79_vm3, %vm78_vm2  ;;  %vm372_vm0 = vcmask 392192  }
  0x40   :  { %887 = vmatpush3.bf16.msk.msra.mxu1 %vm884_vm4, %v1009_v15  ;;  %877 = vmatprep.subr.msk.bf16.mxu0 %vm876_vm8, %v1009_v15  ;;  %vm888_vm12 = vmpackc.low %vm99_vm6, %vm98_vm5  ;;  %p984_p0 = pnand %p983_p13, %p977_p10 }
  0x41   :  { %889 = vmatprep.subr.msk.bf16.mxu1 %vm888_vm12, %v1009_v15  ;;  %879 = vmatpush3.bf16.msk.msra.mxu0 %vm876_vm8, %v1009_v15  ;;  %vm880_vm13 = vmpackc.low %vm81_vm9, %vm80_vm7 }
  0x42   :  { %342 = vxpose.xlu1.b32.cont [3/6] (short) %v65_v13, 128  ;;  %116 = vxpose.xlu0.b32.cont [3/4] (short) %v61_v14, 128  ;;  %vm892_vm14 = vmpackc.low %vm101_vm11, %vm100_vm10 }
  0x43   :  { %881 = vmatprep.subr.msk.bf16.mxu0 %vm880_vm13, %v1009_v15 }
  0x44   :  { %891 = vmatpush3.bf16.msk.msra.mxu1 %vm888_vm12, %v1009_v15 }
  0x45   :  { %893 = vmatprep.subr.msk.bf16.mxu1 %vm892_vm14, %v1009_v15  ;;  %883 = vmatpush3.bf16.msk.msra.mxu0 %vm880_vm13, %v1009_v15 }
  0x46   :  { %343 = vxpose.xlu1.b32.cont [4/6] (short) %v66_v16, 128  ;;  %117 = vxpose.xlu0.b32.end [4/4] (short) %v62_v17, 128 }
  0x48   :  { %895 = vmatpush3.bf16.msk.msra.mxu1 %vm892_vm14, %v1009_v15 }
  0x4a   :  { %344 = vxpose.xlu1.b32.cont [5/6] (short) %v67_v18, 128 }
  0x4e   :  { %345 = vxpose.xlu1.b32.end [6/6] (short) %v68_v19, 128 }
  0xba   :  { %v356_v20 = vpop.trf.xlu1  ;;  %v130_v21 = vpop.trf.xlu0 }
  0xbb   :  { %816 = vmatprep.mubr.msk.f32.mxu0 %vm146_vm15, %v130_v21  ;;  %852 = vmatprep.mubr.msk.f32.mxu1 %vm372_vm0, %v356_v20 }
  0xbe   :  { %v357_v22 = vpop.trf.xlu1  ;;  %v131_v23 = vpop.trf.xlu0 }
  0xbf   :  { %817 = vmatmul.mubr.msk.f32.vlgmr.msra.gmra.mrb[0].mxu0 %vm146_vm15, %v131_v23  ;;  %853 = vmatmul.mubr.msk.f32.vlgmr.msra.gmra.mrb[0].mxu1 %vm372_vm0, %v357_v22 }
  0xc2   :  { %v358_v24 = vpop.trf.xlu1  ;;  %v132_v25 = vpop.trf.xlu0 }
  0xc3   :  { %819 = vmatprep.mubr.msk.f32.mxu0 %vm146_vm15, %v132_v25  ;;  %855 = vmatprep.mubr.msk.f32.mxu1 %vm372_vm0, %v358_v24 }
  0xc6   :  { %v359_v26 = vpop.trf.xlu1  ;;  %v133_v27 = vpop.trf.xlu0 }
  0xc7   :  { %820 = vmatmul.mubr.msk.f32.gmra.mrb[2].mxu0 %vm146_vm15, %v133_v27  ;;  %856 = vmatmul.mubr.msk.f32.gmra.mrb[2].mxu1 %vm372_vm0, %v359_v26 }
  0xca   :  { %v360_v28 = vpop.trf.xlu1  ;;  %v134_v29 = vpop.trf.xlu0 }
  0xcb   :  { %822 = vmatprep.mubr.msk.f32.mxu0 %vm146_vm15, %v134_v29  ;;  %858 = vmatprep.mubr.msk.f32.mxu1 %vm372_vm0, %v360_v28 }
  0xce   :  { %v361_v30 = vpop.trf.xlu1  ;;  %v135_v31 = vpop.trf.xlu0 }
  0xcf   :  { %823 = vmatmul.mubr.msk.f32.gmra.mrb[4].mxu0 %vm146_vm15, %v135_v31  ;;  %859 = vmatmul.mubr.msk.f32.gmra.mrb[4].mxu1 %vm372_vm0, %v361_v30 }
  0xd2   :  { %v362_v32 = vpop.trf.xlu1  ;;  %v136_v33 = vpop.trf.xlu0 }
  0xd3   :  { %825 = vmatprep.mubr.msk.f32.mxu0 %vm146_vm15, %v136_v33  ;;  %861 = vmatprep.mubr.msk.f32.mxu1 %vm372_vm0, %v362_v32 }
  0xd6   :  { %v363_v34 = vpop.trf.xlu1  ;;  %v137_v35 = vpop.trf.xlu0 }
  0xd7   :  { %826 = vmatmul.mubr.msk.f32.gmra.mrb[6].mxu0 %vm146_vm15, %v137_v35  ;;  %862 = vmatmul.mubr.msk.f32.gmra.mrb[6].mxu1 %vm372_vm0, %v363_v34 }
  0xda   :  { %v364_v36 = vpop.trf.xlu1  ;;  %v138_v37 = vpop.trf.xlu0 }
  0xdb   :  { %828 = vmatprep.mubr.msk.f32.mxu0 %vm146_vm15, %v138_v37  ;;  %864 = vmatprep.mubr.msk.f32.mxu1 %vm372_vm0, %v364_v36 }
  0xde   :  { %v365_v38 = vpop.trf.xlu1  ;;  %v139_v39 = vpop.trf.xlu0 }
  0xdf   :  { %829 = vmatmul.mubr.msk.f32.gmra.mrb[8].mxu0 %vm146_vm15, %v139_v39  ;;  %865 = vmatmul.mubr.msk.f32.gmra.mrb[8].mxu1 %vm372_vm0, %v365_v38 }
  0xe2   :  { %v366_v40 = vpop.trf.xlu1  ;;  %v140_v41 = vpop.trf.xlu0 }
  0xe3   :  { %831 = vmatprep.mubr.msk.f32.mxu0 %vm146_vm15, %v140_v41  ;;  %867 = vmatprep.mubr.msk.f32.mxu1 %vm372_vm0, %v366_v40 }
  0xe6   :  { %v367_v42 = vpop.trf.xlu1  ;;  %v141_v43 = vpop.trf.xlu0 }
  0xe7   :  { %832 = vmatmul.mubr.msk.f32.gmra.mrb[10].mxu0 %vm146_vm15, %v141_v43  ;;  %868 = vmatmul.mubr.msk.f32.gmra.mrb[10].mxu1 %vm372_vm0, %v367_v42 }
  0xea   :  { %v368_v44 = vpop.trf.xlu1  ;;  %v142_v45 = vpop.trf.xlu0 }
  0xeb   :  { %834 = vmatprep.mubr.msk.f32.mxu0 %vm146_vm15, %v142_v45  ;;  %870 = vmatprep.mubr.msk.f32.mxu1 %vm372_vm0, %v368_v44 }
  0xee   :  { %v369_v46 = vpop.trf.xlu1  ;;  %v143_v47 = vpop.trf.xlu0 }
  0xef   :  { %835 = vmatmul.mubr.msk.f32.gmra.mrb[12].mxu0 %vm146_vm15, %v143_v47  ;;  %871 = vmatmul.mubr.msk.f32.gmra.mrb[12].mxu1 %vm372_vm0, %v369_v46 }
  0xf2   :  { %v370_v48 = vpop.trf.xlu1  ;;  %v144_v49 = vpop.trf.xlu0 }
  0xf3   :  { %837 = vmatprep.mubr.msk.f32.mxu0 %vm146_vm15, %v144_v49  ;;  %873 = vmatprep.mubr.msk.f32.mxu1 %vm372_vm0, %v370_v48 }
  0xf6   :  { %v371_v50 = vpop.trf.xlu1  ;;  %v145_v51 = vpop.trf.xlu0 }
  0xf7   :  { %838 = vmatmul.mubr.msk.f32.gmra.mrb[14].mxu0 %vm146_vm15, %v145_v51  ;;  %874 = vmatmul.mubr.msk.f32.gmra.mrb[14].mxu1 %vm372_vm0, %v371_v50 }
 0x192   :  { %v818_v52 = vpop.f32.mrb[0].mxu0  ;;  %v854_v53 = vpop.f32.mrb[0].mxu1 }
 0x193   :  { %v604_v54 = vmul.f32 %v818_v52, %v818_v52  ;;  %v567_v55 = vmul.f32 %v854_v53, %v818_v52  ;;  %v648_v56 = vmul.f32 %v854_v53, %v854_v53  ;;  %v261_v57 = vpop.f32.mrb[1].mxu0  ;;  %v487_v58 = vpop.f32.mrb[1].mxu1 }
 0x194   :  { %v603_v59 = vmul.f32 %v261_v57, %v261_v57  ;;  %v566_v60 = vmul.f32 %v487_v58, %v261_v57  ;;  %v647_v61 = vmul.f32 %v487_v58, %v487_v58 }
 0x196   :  { %v619_v62 = vadd.f32 %v604_v54, %v603_v59  ;;  %v582_v63 = vadd.f32 %v567_v55, %v566_v60  ;;  %v663_v0 = vadd.f32 %v648_v56, %v647_v61 }
 0x19a   :  { %v821_v1 = vpop.f32.mrb[2].mxu0  ;;  %v857_v2 = vpop.f32.mrb[2].mxu1 }
 0x19b   :  { %v569_v3 = vmul.f32 %v857_v2, %v821_v1  ;;  %v271_v4 = vpop.f32.mrb[3].mxu0  ;;  %v497_v5 = vpop.f32.mrb[3].mxu1  ;;  %v606_v9 = vmul.f32 %v821_v1, %v821_v1  ;;  %v650_v10 = vmul.f32 %v857_v2, %v857_v2 }
 0x19c   :  { %v605_v6 = vmul.f32 %v271_v4, %v271_v4  ;;  %v568_v7 = vmul.f32 %v497_v5, %v271_v4  ;;  %v649_v8 = vmul.f32 %v497_v5, %v497_v5 }
 0x19e   :  { %v620_v11 = vadd.f32 %v619_v62, %v605_v6  ;;  %v583_v12 = vadd.f32 %v582_v63, %v568_v7  ;;  %v664_v13 = vadd.f32 %v663_v0, %v649_v8 }
 0x1a0   :  { %v621_v14 = vadd.f32 %v620_v11, %v606_v9  ;;  %v584_v15 = vadd.f32 %v583_v12, %v569_v3  ;;  %v665_v16 = vadd.f32 %v664_v13, %v650_v10 }
 0x1a2   :  { %v824_v17 = vpop.f32.mrb[4].mxu0  ;;  %v860_v18 = vpop.f32.mrb[4].mxu1 }
 0x1a3   :  { %v571_v19 = vmul.f32 %v860_v18, %v824_v17  ;;  %v281_v20 = vpop.f32.mrb[5].mxu0  ;;  %v507_v21 = vpop.f32.mrb[5].mxu1  ;;  %v608_v25 = vmul.f32 %v824_v17, %v824_v17  ;;  %v652_v26 = vmul.f32 %v860_v18, %v860_v18 }
 0x1a4   :  { %v607_v22 = vmul.f32 %v281_v20, %v281_v20  ;;  %v570_v23 = vmul.f32 %v507_v21, %v281_v20  ;;  %v651_v24 = vmul.f32 %v507_v21, %v507_v21 }
 0x1a6   :  { %v622_v27 = vadd.f32 %v621_v14, %v607_v22  ;;  %v585_v28 = vadd.f32 %v584_v15, %v570_v23  ;;  %v666_v29 = vadd.f32 %v665_v16, %v651_v24 }
 0x1a8   :  { %v623_v30 = vadd.f32 %v622_v27, %v608_v25  ;;  %v586_v31 = vadd.f32 %v585_v28, %v571_v19  ;;  %v667_v32 = vadd.f32 %v666_v29, %v652_v26 }
 0x1aa   :  { %v827_v33 = vpop.f32.mrb[6].mxu0  ;;  %v863_v34 = vpop.f32.mrb[6].mxu1 }
 0x1ab   :  { %v573_v35 = vmul.f32 %v863_v34, %v827_v33  ;;  %v291_v36 = vpop.f32.mrb[7].mxu0  ;;  %v517_v37 = vpop.f32.mrb[7].mxu1  ;;  %v610_v41 = vmul.f32 %v827_v33, %v827_v33  ;;  %v654_v42 = vmul.f32 %v863_v34, %v863_v34 }
 0x1ac   :  { %v609_v38 = vmul.f32 %v291_v36, %v291_v36  ;;  %v572_v39 = vmul.f32 %v517_v37, %v291_v36  ;;  %v653_v40 = vmul.f32 %v517_v37, %v517_v37 }
 0x1ae   :  { %v624_v43 = vadd.f32 %v623_v30, %v609_v38  ;;  %v587_v44 = vadd.f32 %v586_v31, %v572_v39  ;;  %v668_v45 = vadd.f32 %v667_v32, %v653_v40 }
 0x1b0   :  { %v625_v46 = vadd.f32 %v624_v43, %v610_v41  ;;  %v588_v47 = vadd.f32 %v587_v44, %v573_v35  ;;  %v669_v48 = vadd.f32 %v668_v45, %v654_v42 }
 0x1b2   :  { %v830_v49 = vpop.f32.mrb[8].mxu0  ;;  %v866_v50 = vpop.f32.mrb[8].mxu1 }
 0x1b3   :  { %v575_v51 = vmul.f32 %v866_v50, %v830_v49  ;;  %v301_v52 = vpop.f32.mrb[9].mxu0  ;;  %v527_v53 = vpop.f32.mrb[9].mxu1  ;;  %v612_v57 = vmul.f32 %v830_v49, %v830_v49  ;;  %v656_v58 = vmul.f32 %v866_v50, %v866_v50 }
 0x1b4   :  { %v611_v54 = vmul.f32 %v301_v52, %v301_v52  ;;  %v574_v55 = vmul.f32 %v527_v53, %v301_v52  ;;  %v655_v56 = vmul.f32 %v527_v53, %v527_v53 }
 0x1b6   :  { %v626_v59 = vadd.f32 %v625_v46, %v611_v54  ;;  %v589_v60 = vadd.f32 %v588_v47, %v574_v55  ;;  %v670_v61 = vadd.f32 %v669_v48, %v655_v56 }
 0x1b8   :  { %v627_v62 = vadd.f32 %v626_v59, %v612_v57  ;;  %v590_v63 = vadd.f32 %v589_v60, %v575_v51  ;;  %v671_v0 = vadd.f32 %v670_v61, %v656_v58 }
 0x1ba   :  { %v833_v1 = vpop.f32.mrb[10].mxu0  ;;  %v869_v2 = vpop.f32.mrb[10].mxu1 }
 0x1bb   :  { %v577_v3 = vmul.f32 %v869_v2, %v833_v1  ;;  %v311_v4 = vpop.f32.mrb[11].mxu0  ;;  %v537_v5 = vpop.f32.mrb[11].mxu1  ;;  %v614_v9 = vmul.f32 %v833_v1, %v833_v1  ;;  %v658_v10 = vmul.f32 %v869_v2, %v869_v2 }
 0x1bc   :  { %v613_v6 = vmul.f32 %v311_v4, %v311_v4  ;;  %v576_v7 = vmul.f32 %v537_v5, %v311_v4  ;;  %v657_v8 = vmul.f32 %v537_v5, %v537_v5 }
 0x1be   :  { %v628_v11 = vadd.f32 %v627_v62, %v613_v6  ;;  %v591_v12 = vadd.f32 %v590_v63, %v576_v7  ;;  %v672_v13 = vadd.f32 %v671_v0, %v657_v8 }
 0x1c0   :  { %v629_v14 = vadd.f32 %v628_v11, %v614_v9  ;;  %v592_v15 = vadd.f32 %v591_v12, %v577_v3  ;;  %v673_v16 = vadd.f32 %v672_v13, %v658_v10 }
 0x1c2   :  { %v836_v17 = vpop.f32.mrb[12].mxu0  ;;  %v872_v18 = vpop.f32.mrb[12].mxu1 }
 0x1c3   :  { %v579_v19 = vmul.f32 %v872_v18, %v836_v17  ;;  %v321_v20 = vpop.f32.mrb[13].mxu0  ;;  %v547_v21 = vpop.f32.mrb[13].mxu1  ;;  %v616_v25 = vmul.f32 %v836_v17, %v836_v17  ;;  %v660_v26 = vmul.f32 %v872_v18, %v872_v18 }
 0x1c4   :  { %v615_v22 = vmul.f32 %v321_v20, %v321_v20  ;;  %v578_v23 = vmul.f32 %v547_v21, %v321_v20  ;;  %v659_v24 = vmul.f32 %v547_v21, %v547_v21 }
 0x1c6   :  { %v630_v27 = vadd.f32 %v629_v14, %v615_v22  ;;  %v593_v28 = vadd.f32 %v592_v15, %v578_v23  ;;  %v674_v29 = vadd.f32 %v673_v16, %v659_v24 }
 0x1c8   :  { %v631_v30 = vadd.f32 %v630_v27, %v616_v25  ;;  %v594_v31 = vadd.f32 %v593_v28, %v579_v19  ;;  %v675_v32 = vadd.f32 %v674_v29, %v660_v26 }
 0x1ca   :  { %v839_v33 = vpop.f32.mrb[14].mxu0  ;;  %v875_v34 = vpop.f32.mrb[14].mxu1 }
 0x1cb   :  { %v581_v35 = vmul.f32 %v875_v34, %v839_v33  ;;  %v331_v36 = vpop.f32.mrb[15].mxu0  ;;  %v557_v37 = vpop.f32.mrb[15].mxu1  ;;  %v618_v41 = vmul.f32 %v839_v33, %v839_v33  ;;  %v662_v42 = vmul.f32 %v875_v34, %v875_v34 }
 0x1cc   :  { %v617_v38 = vmul.f32 %v331_v36, %v331_v36  ;;  %v580_v39 = vmul.f32 %v557_v37, %v331_v36  ;;  %v661_v40 = vmul.f32 %v557_v37, %v557_v37 }
 0x1ce   :  { %v632_v43 = vadd.f32 %v631_v30, %v617_v38  ;;  %v595_v44 = vadd.f32 %v594_v31, %v580_v39  ;;  %v676_v45 = vadd.f32 %v675_v32, %v661_v40 }
 0x1d0   :  { %v633_v46 = vadd.f32 %v632_v43, %v618_v41  ;;  %v596_v47 = vadd.f32 %v595_v44, %v581_v35  ;;  %v677_v48 = vadd.f32 %v676_v45, %v662_v42 }
 0x1d2   :  { %v634_v49 = vrot.slane %v633_v46, 4  ;;  %v678_v50 = vrot.slane %v677_v48, 4  ;;  %v597_v61 = vrot.slane %v596_v47, 4 }
 0x1d4   :  { %v635_v51 = vadd.f32 %v634_v49, %v633_v46  ;;  %v679_v52 = vadd.f32 %v678_v50, %v677_v48  ;;  %v598_v1 = vadd.f32 %v597_v61, %v596_v47 }
 0x1d6   :  { %v636_v53 = vrot.slane %v635_v51, 2  ;;  %v680_v54 = vrot.slane %v679_v52, 2  ;;  %v599_v10 = vrot.slane %v598_v1, 2 }
 0x1d8   :  { %v637_v55 = vadd.f32 %v636_v53, %v635_v51  ;;  %v681_v56 = vadd.f32 %v680_v54, %v679_v52  ;;  %v600_v12 = vadd.f32 %v599_v10, %v598_v1 }
 0x1da   :  { %v638_v57 = vrot.slane %v637_v55, 1  ;;  %v682_v58 = vrot.slane %v681_v56, 1  ;;  %v601_v13 = vrot.slane %v600_v12, 1 }
 0x1dc   :  { %v639_v59 = vadd.f32 %v638_v57, %v637_v55  ;;  %v683_v60 = vadd.f32 %v682_v58, %v681_v56  ;;  %v602_v14 = vadd.f32 %v601_v13, %v600_v12 }
 0x1de   :  { %904 = vrsqrt.f32 %v639_v59  ;;  %vm642_vm1 = vcmp.eq.f32.partialorder %v639_v59, inf  ;;  %v645_v2 = vand.u32 2147483648, %v639_v59  ;;  %vm644_vm2 = vcmp.eq.f32.partialorder %v639_v59, 0.0 }
 0x1df   :  { %906 = vrsqrt.f32 %v683_v60  ;;  %vm686_vm3 = vcmp.eq.f32.partialorder %v683_v60, inf  ;;  %v689_v5 = vand.u32 2147483648, %v683_v60  ;;  %vm688_vm4 = vcmp.eq.f32.partialorder %v683_v60, 0.0 }
 0x1e8   :  { %v905_v62 = vpop.eup %904 }
 0x1e9   :  { %v907_v63 = vpop.eup %906  ;;  %v641_v0 = vmul.f32 %v905_v62, %v639_v59 }
 0x1ea   :  { %v685_v3 = vmul.f32 %v907_v63, %v683_v60 }
 0x1eb   :  { %v643_v4 = vsel %vm642_vm1, %v639_v59, %v641_v0 }
 0x1ec   :  { %v646_v6 = vsel %vm644_vm2, %v645_v2, %v643_v4  ;;  %v687_v7 = vsel %vm686_vm3, %v683_v60, %v685_v3 }
 0x1ed   :  { %v690_v8 = vsel %vm688_vm4, %v689_v5, %v687_v7 }
 0x1ee   :  { %v691_v9 = vmul.f32 %v690_v8, %v646_v6 }
 0x1f0   :  { %v692_v11 = vmax.f32 %v691_v9, 1e-08 }
 0x1f2   :  { %908 = vrcp.f32 %v692_v11 }
 0x1fc   :  { %v909_v15 = vpop.eup %908 }
 0x1fd   :  { %v694_v16 = vmul.f32 %v909_v15, %v602_v14 }
 0x1ff   :  { %695 = vst [vmem:[#allocation8] sm:$0x1] %v694_v16 }
 0x200   :  { %987 = shalt.err (!%p984_p0)
}
 0x201   :  { %s988_s6 = scalar_lea.hbm %s1129_s4, 16 }
 0x202   :  { %p989_p1 = scmp.ne.s32.totalorder %s1129_s4, %s988_s6  ;;  %p992_p2 = scmp.lt.u32.totalorder %s988_s6, %s1129_s4 }
 0x204   :  { %p994_p3 = pnand %p992_p2, %p989_p1 }
 0x206   :  { %997 = shalt.err (!%p994_p3)
}
 0x207   :  { %705 = dma.vmem_to_hbm [thread:$0]  %s703_s3, 16, %s1129_s4, [#allocation4]  }
 0x208   :  { %1002 = dma.done.wait [#allocation4], 16  }
 0x209   :  { %1003 = vsyncadd [#allocation4], 4294967280 }
 0x20a   :  { %709 = vsyncpa [#allocation3], 1 }
 0x20b   :  { %710 = vsyncpa [#allocation6], 1 }
 0x20c   :  { %711 = vsyncpa [#allocation4], 1 }

// kernel: tpu_custom_call.1
= control target key start
LH: loop header
LB: loop body
LE: loop exit
PB: predicated region body
PF: predicated region fallthrough
CT: control target
= control target key end

     0   :  { %9 = vsyncpa [#allocation3], 0  ;;  %s1125_s0 = inlined_call_operand.hbm [shape: s32[1,128], index: 0, kind: input, shape index: {}]   ;;  %s1126_s1 = inlined_call_operand.vmem [shape: s32[1,128], index: 1, kind: input, shape index: {}]   ;;  %s1127_s2 = inlined_call_operand.hbm [shape: f32[32,128], index: 2, kind: input, shape index: {}]   ;;  %s1128_s3 = inlined_call_operand.hbm [shape: f32[48,128], index: 3, kind: input, shape index: {}]   ;;  %s1129_s4 = inlined_call_operand.hbm [shape: f32[1,128], index: 4, kind: output, shape index: {}]  }
   0x1   :  { %10 = vsyncpa [#allocation6], 0 }
   0x2   :  { %11 = vsyncpa [#allocation4], 0  ;;  %s1004_s15 = smov [#allocation5]   ;;  %s910_s19 = scalar_lea.hbm %s1127_s2, 512 }
   0x3   :  { %s29_s16 = sshll.u32 %s1004_s15, 4  ;;  %p911_p0 = scmp.ne.s32.totalorder %s1127_s2, %s910_s19  ;;  %s30_s16 = int_to_ptr.vmem [resolvable:$true] %s29_s16 }
   0x4   :  { %p914_p1 = scmp.lt.u32.totalorder %s910_s19, %s1127_s2 }
   0x6   :  { %p916_p2 = pnand %p914_p1, %p911_p0 }
   0x8   :  { %919 = shalt.err (!%p916_p2)
}
   0x9   :  { %s920_s24 = scalar_lea.vmem %s30_s16, 512  ;;  %p925_p4 = scmp.lt.s32.totalorder %s30_s16, %s30_s16 }
   0xa   :  { %p921_p3 = scmp.ne.s32.totalorder %s30_s16, %s920_s24  ;;  %p926_p5 = scmp.lt.s32.totalorder %s920_s24, %s920_s24 }
   0xc   :  { %p927_p6 = por %p926_p5, %p925_p4 }
   0xe   :  { %p928_p7 = pnand %p927_p6, %p921_p3 }
  0x10   :  { %931 = shalt.err (!%p928_p7)
}
  0x11   :  { %s1005_s25 = smov 128   ;;  %s1006_s26 = smov 8  }
  0x12   :  { %35 = dma.hbm_to_vmem [thread:$0]  %s1127_s2, 512, %s30_s16, [#allocation6], %s1005_s25, %s1005_s25, %s1006_s26  }
  0x13   :  { %s1007_s29 = smov [#allocation2]   ;;  %s1008_s5 = smov [#allocation7]  }
  0x14   :  { %s18_s30 = sshll.u32 %s1007_s29, 4  ;;  %s41_s6 = sshll.u32 %s1008_s5, 4  ;;  %s19_s30 = int_to_ptr.vmem [resolvable:$true] %s18_s30  ;;  %s42_s6 = int_to_ptr.vmem [resolvable:$true] %s41_s6 }
  0x15   :  { %s932_s9 = scalar_lea.hbm %s1125_s0, 16 }
  0x16   :  { %p933_p8 = scmp.ne.s32.totalorder %s1125_s0, %s932_s9  ;;  %p936_p9 = scmp.lt.u32.totalorder %s932_s9, %s1125_s0 }
  0x18   :  { %p938_p10 = pnand %p936_p9, %p933_p8 }
  0x1a   :  { %941 = shalt.err (!%p938_p10)
}
  0x1b   :  { %s942_s2 = scalar_lea.vmem %s19_s30, 16  ;;  %s946_s14 = scalar_lea.vmem %s19_s30, 32 }
  0x1c   :  { %p943_p11 = scmp.ne.s32.totalorder %s19_s30, %s942_s2  ;;  %p947_p12 = scmp.lt.s32.totalorder %s19_s30, %s19_s30 }
  0x1d   :  { %p948_p13 = scmp.lt.s32.totalorder %s946_s14, %s942_s2 }
  0x1f   :  { %p949_p0 = por %p948_p13, %p947_p12 }
  0x21   :  { %p950_p1 = pnand %p949_p0, %p943_p11 }
  0x23   :  { %953 = shalt.err (!%p950_p1)
}
  0x24   :  { %21 = dma.hbm_to_vmem [thread:$0]  %s1125_s0, 16, %s19_s30, [#allocation3]  }
  0x25   :  { %s954_s19 = scalar_lea.hbm %s1128_s3, 768 }
  0x26   :  { %p955_p2 = scmp.ne.s32.totalorder %s1128_s3, %s954_s19  ;;  %p958_p3 = scmp.lt.u32.totalorder %s954_s19, %s1128_s3 }
  0x28   :  { %p960_p4 = pnand %p958_p3, %p955_p2 }
  0x2a   :  { %963 = shalt.err (!%p960_p4)
}
  0x2b   :  { %s964_s24 = scalar_lea.vmem %s42_s6, 768  ;;  %p969_p6 = scmp.lt.s32.totalorder %s42_s6, %s42_s6 }
  0x2c   :  { %p965_p5 = scmp.ne.s32.totalorder %s42_s6, %s964_s24  ;;  %p970_p7 = scmp.lt.s32.totalorder %s964_s24, %s964_s24 }
  0x2e   :  { %p971_p8 = por %p970_p7, %p969_p6 }
  0x30   :  { %p972_p9 = pnand %p971_p8, %p965_p5 }
  0x32   :  { %975 = shalt.err (!%p972_p9)
}
  0x33   :  { %47 = dma.hbm_to_vmem [thread:$0]  %s1128_s3, 768, %s42_s6, [#allocation6], %s1005_s25, %s1005_s25, %s1006_s26  }
  0x34   :  { %998 = dma.done.wait [#allocation3], 16  }
  0x35   :  { %999 = vsyncadd [#allocation3], 4294967280 }
  0x36   :  { %1000 = dma.done.wait [#allocation6], 1280  }
  0x37   :  { %1001 = vsyncadd [#allocation6], 4294966016  ;;  %v69_v0 = vlaneseq  ;;  %v63_v2 = vld [vmem:[#allocation7] sm:$0xff]  ;;  %v64_v7 = vld [vmem:[#allocation7 + $0x8] sm:$0xff]  ;;  %v1009_v15 = vmov 1.0|1.0  }
  0x38   :  { %v59_v3 = vld [vmem:[#allocation5] sm:$0xff]  ;;  %340 = vxpose.xlu1.b32.start [1/6] (short) %v63_v2, 128  ;;  %v60_v8 = vld [vmem:[#allocation5 + $0x8] sm:$0xff]  ;;  %v717_v11 = vld [vmem:[%s1126_s1] ss:$0 sm:$0xff]  ;;  %vm146_vm15 = vcmask 261120   ;;  %s1010_s1 = smov [#allocation8]  }
  0x39   :  { %v70_v1 = vshrl.u32 %v69_v0, 7  ;;  %114 = vxpose.xlu0.b32.start [1/4] (short) %v59_v3, 128  ;;  %v712_v12 = vld [vmem:[#allocation2] ss:$0 sm:$0xff]  ;;  %v65_v13 = vld [vmem:[#allocation7 + $0x10] sm:$0xff]  ;;  %v67_v18 = vld [vmem:[#allocation7 + $0x20] sm:$0xff]  ;;  %s702_s3 = sshll.u32 %s1010_s1, 4  ;;  %s703_s3 = int_to_ptr.vmem [resolvable:$true] %s702_s3 }
  0x3a   :  { %v61_v14 = vld [vmem:[#allocation5 + $0x10] sm:$0xff]  ;;  %v66_v16 = vld [vmem:[#allocation7 + $0x18] sm:$0xff]  ;;  %v68_v19 = vld [vmem:[#allocation7 + $0x28] sm:$0xff]  ;;  %s976_s25 = scalar_lea.vmem %s703_s3, 16  ;;  %s980_s26 = scalar_lea.vmem %s703_s3, 32 }
  0x3b   :  { %v71_v4 = vadd.s32 8, %v70_v1  ;;  %v72_v5 = vadd.s32 16, %v70_v1  ;;  %v73_v6 = vadd.s32 24, %v70_v1  ;;  %v90_v9 = vadd.s32 32, %v70_v1  ;;  %v62_v17 = vld [vmem:[#allocation5 + $0x18] sm:$0xff]  ;;  %p977_p10 = scmp.ne.s32.totalorder %s703_s3, %s976_s25  ;;  %p981_p11 = scmp.lt.s32.totalorder %s703_s3, %s703_s3 }
  0x3c   :  { %v91_v10 = vadd.s32 40, %v70_v1  ;;  %vm96_vm0 = vcmp.eq.s32.totalorder %v70_v1, %v717_v11  ;;  %vm78_vm2 = vcmp.eq.s32.totalorder %v70_v1, %v712_v12  ;;  %341 = vxpose.xlu1.b32.cont [2/6] (short) %v64_v7, 128  ;;  %p982_p12 = scmp.lt.s32.totalorder %s980_s26, %s976_s25 }
  0x3d   :  { %vm97_vm1 = vcmp.eq.s32.totalorder %v71_v4, %v717_v11  ;;  %vm79_vm3 = vcmp.eq.s32.totalorder %v71_v4, %v712_v12  ;;  %115 = vxpose.xlu0.b32.cont [2/4] (short) %v60_v8, 128  ;;  %vm98_vm5 = vcmp.eq.s32.totalorder %v72_v5, %v717_v11  ;;  %vm99_vm6 = vcmp.eq.s32.totalorder %v73_v6, %v717_v11 }
  0x3e   :  { %vm884_vm4 = vmpackc.low %vm97_vm1, %vm96_vm0  ;;  %vm80_vm7 = vcmp.eq.s32.totalorder %v72_v5, %v712_v12  ;;  %vm81_vm9 = vcmp.eq.s32.totalorder %v73_v6, %v712_v12  ;;  %vm100_vm10 = vcmp.eq.s32.totalorder %v90_v9, %v717_v11  ;;  %vm101_vm11 = vcmp.eq.s32.totalorder %v91_v10, %v717_v11  ;;  %p983_p13 = por %p982_p12, %p981_p11 }
  0x3f   :  { %885 = vmatprep.subr.msk.bf16.mxu1 %vm884_vm4, %v1009_v15  ;;  %vm876_vm8 = vmpackc.low %vm79_vm3, %vm78_vm2  ;;  %vm372_vm0 = vcmask 392192  }
  0x40   :  { %887 = vmatpush3.bf16.msk.msra.mxu1 %vm884_vm4, %v1009_v15  ;;  %877 = vmatprep.subr.msk.bf16.mxu0 %vm876_vm8, %v1009_v15  ;;  %vm888_vm12 = vmpackc.low %vm99_vm6, %vm98_vm5  ;;  %p984_p0 = pnand %p983_p13, %p977_p10 }
  0x41   :  { %889 = vmatprep.subr.msk.bf16.mxu1 %vm888_vm12, %v1009_v15  ;;  %879 = vmatpush3.bf16.msk.msra.mxu0 %vm876_vm8, %v1009_v15  ;;  %vm880_vm13 = vmpackc.low %vm81_vm9, %vm80_vm7 }
  0x42   :  { %342 = vxpose.xlu1.b32.cont [3/6] (short) %v65_v13, 128  ;;  %116 = vxpose.xlu0.b32.cont [3/4] (short) %v61_v14, 128  ;;  %vm892_vm14 = vmpackc.low %vm101_vm11, %vm100_vm10 }
  0x43   :  { %881 = vmatprep.subr.msk.bf16.mxu0 %vm880_vm13, %v1009_v15 }
  0x44   :  { %891 = vmatpush3.bf16.msk.msra.mxu1 %vm888_vm12, %v1009_v15 }
  0x45   :  { %893 = vmatprep.subr.msk.bf16.mxu1 %vm892_vm14, %v1009_v15  ;;  %883 = vmatpush3.bf16.msk.msra.mxu0 %vm880_vm13, %v1009_v15 }
  0x46   :  { %343 = vxpose.xlu1.b32.cont [4/6] (short) %v66_v16, 128  ;;  %117 = vxpose.xlu0.b32.end [4/4] (short) %v62_v17, 128 }
  0x48   :  { %895 = vmatpush3.bf16.msk.msra.mxu1 %vm892_vm14, %v1009_v15 }
  0x4a   :  { %344 = vxpose.xlu1.b32.cont [5/6] (short) %v67_v18, 128 }
  0x4e   :  { %345 = vxpose.xlu1.b32.end [6/6] (short) %v68_v19, 128 }
  0xba   :  { %v356_v20 = vpop.trf.xlu1  ;;  %v130_v21 = vpop.trf.xlu0 }
  0xbb   :  { %816 = vmatprep.mubr.msk.f32.mxu0 %vm146_vm15, %v130_v21  ;;  %852 = vmatprep.mubr.msk.f32.mxu1 %vm372_vm0, %v356_v20 }
  0xbe   :  { %v357_v22 = vpop.trf.xlu1  ;;  %v131_v23 = vpop.trf.xlu0 }
  0xbf   :  { %817 = vmatmul.mubr.msk.f32.vlgmr.msra.gmra.mrb[0].mxu0 %vm146_vm15, %v131_v23  ;;  %853 = vmatmul.mubr.msk.f32.vlgmr.msra.gmra.mrb[0].mxu1 %vm372_vm0, %v357_v22 }
  0xc2   :  { %v358_v24 = vpop.trf.xlu1  ;;  %v132_v25 = vpop.trf.xlu0 }
  0xc3   :  { %819 = vmatprep.mubr.msk.f32.mxu0 %vm146_vm15, %v132_v25  ;;  %855 = vmatprep.mubr.msk.f32.mxu1 %vm372_vm0, %v358_v24 }
  0xc6   :  { %v359_v26 = vpop.trf.xlu1  ;;  %v133_v27 = vpop.trf.xlu0 }
  0xc7   :  { %820 = vmatmul.mubr.msk.f32.gmra.mrb[2].mxu0 %vm146_vm15, %v133_v27  ;;  %856 = vmatmul.mubr.msk.f32.gmra.mrb[2].mxu1 %vm372_vm0, %v359_v26 }
  0xca   :  { %v360_v28 = vpop.trf.xlu1  ;;  %v134_v29 = vpop.trf.xlu0 }
  0xcb   :  { %822 = vmatprep.mubr.msk.f32.mxu0 %vm146_vm15, %v134_v29  ;;  %858 = vmatprep.mubr.msk.f32.mxu1 %vm372_vm0, %v360_v28 }
  0xce   :  { %v361_v30 = vpop.trf.xlu1  ;;  %v135_v31 = vpop.trf.xlu0 }
  0xcf   :  { %823 = vmatmul.mubr.msk.f32.gmra.mrb[4].mxu0 %vm146_vm15, %v135_v31  ;;  %859 = vmatmul.mubr.msk.f32.gmra.mrb[4].mxu1 %vm372_vm0, %v361_v30 }
  0xd2   :  { %v362_v32 = vpop.trf.xlu1  ;;  %v136_v33 = vpop.trf.xlu0 }
  0xd3   :  { %825 = vmatprep.mubr.msk.f32.mxu0 %vm146_vm15, %v136_v33  ;;  %861 = vmatprep.mubr.msk.f32.mxu1 %vm372_vm0, %v362_v32 }
  0xd6   :  { %v363_v34 = vpop.trf.xlu1  ;;  %v137_v35 = vpop.trf.xlu0 }
  0xd7   :  { %826 = vmatmul.mubr.msk.f32.gmra.mrb[6].mxu0 %vm146_vm15, %v137_v35  ;;  %862 = vmatmul.mubr.msk.f32.gmra.mrb[6].mxu1 %vm372_vm0, %v363_v34 }
  0xda   :  { %v364_v36 = vpop.trf.xlu1  ;;  %v138_v37 = vpop.trf.xlu0 }
  0xdb   :  { %828 = vmatprep.mubr.msk.f32.mxu0 %vm146_vm15, %v138_v37  ;;  %864 = vmatprep.mubr.msk.f32.mxu1 %vm372_vm0, %v364_v36 }
  0xde   :  { %v365_v38 = vpop.trf.xlu1  ;;  %v139_v39 = vpop.trf.xlu0 }
  0xdf   :  { %829 = vmatmul.mubr.msk.f32.gmra.mrb[8].mxu0 %vm146_vm15, %v139_v39  ;;  %865 = vmatmul.mubr.msk.f32.gmra.mrb[8].mxu1 %vm372_vm0, %v365_v38 }
  0xe2   :  { %v366_v40 = vpop.trf.xlu1  ;;  %v140_v41 = vpop.trf.xlu0 }
  0xe3   :  { %831 = vmatprep.mubr.msk.f32.mxu0 %vm146_vm15, %v140_v41  ;;  %867 = vmatprep.mubr.msk.f32.mxu1 %vm372_vm0, %v366_v40 }
  0xe6   :  { %v367_v42 = vpop.trf.xlu1  ;;  %v141_v43 = vpop.trf.xlu0 }
  0xe7   :  { %832 = vmatmul.mubr.msk.f32.gmra.mrb[10].mxu0 %vm146_vm15, %v141_v43  ;;  %868 = vmatmul.mubr.msk.f32.gmra.mrb[10].mxu1 %vm372_vm0, %v367_v42 }
  0xea   :  { %v368_v44 = vpop.trf.xlu1  ;;  %v142_v45 = vpop.trf.xlu0 }
  0xeb   :  { %834 = vmatprep.mubr.msk.f32.mxu0 %vm146_vm15, %v142_v45  ;;  %870 = vmatprep.mubr.msk.f32.mxu1 %vm372_vm0, %v368_v44 }
  0xee   :  { %v369_v46 = vpop.trf.xlu1  ;;  %v143_v47 = vpop.trf.xlu0 }
  0xef   :  { %835 = vmatmul.mubr.msk.f32.gmra.mrb[12].mxu0 %vm146_vm15, %v143_v47  ;;  %871 = vmatmul.mubr.msk.f32.gmra.mrb[12].mxu1 %vm372_vm0, %v369_v46 }
  0xf2   :  { %v370_v48 = vpop.trf.xlu1  ;;  %v144_v49 = vpop.trf.xlu0 }
  0xf3   :  { %837 = vmatprep.mubr.msk.f32.mxu0 %vm146_vm15, %v144_v49  ;;  %873 = vmatprep.mubr.msk.f32.mxu1 %vm372_vm0, %v370_v48 }
  0xf6   :  { %v371_v50 = vpop.trf.xlu1  ;;  %v145_v51 = vpop.trf.xlu0 }
  0xf7   :  { %838 = vmatmul.mubr.msk.f32.gmra.mrb[14].mxu0 %vm146_vm15, %v145_v51  ;;  %874 = vmatmul.mubr.msk.f32.gmra.mrb[14].mxu1 %vm372_vm0, %v371_v50 }
 0x192   :  { %v818_v52 = vpop.f32.mrb[0].mxu0  ;;  %v854_v53 = vpop.f32.mrb[0].mxu1 }
 0x193   :  { %v604_v54 = vmul.f32 %v818_v52, %v818_v52  ;;  %v567_v55 = vmul.f32 %v854_v53, %v818_v52  ;;  %v648_v56 = vmul.f32 %v854_v53, %v854_v53  ;;  %v261_v57 = vpop.f32.mrb[1].mxu0  ;;  %v487_v58 = vpop.f32.mrb[1].mxu1 }
 0x194   :  { %v603_v59 = vmul.f32 %v261_v57, %v261_v57  ;;  %v566_v60 = vmul.f32 %v487_v58, %v261_v57  ;;  %v647_v61 = vmul.f32 %v487_v58, %v487_v58 }
 0x196   :  { %v619_v62 = vadd.f32 %v604_v54, %v603_v59  ;;  %v582_v63 = vadd.f32 %v567_v55, %v566_v60  ;;  %v663_v0 = vadd.f32 %v648_v56, %v647_v61 }
 0x19a   :  { %v821_v1 = vpop.f32.mrb[2].mxu0  ;;  %v857_v2 = vpop.f32.mrb[2].mxu1 }
 0x19b   :  { %v569_v3 = vmul.f32 %v857_v2, %v821_v1  ;;  %v271_v4 = vpop.f32.mrb[3].mxu0  ;;  %v497_v5 = vpop.f32.mrb[3].mxu1  ;;  %v606_v9 = vmul.f32 %v821_v1, %v821_v1  ;;  %v650_v10 = vmul.f32 %v857_v2, %v857_v2 }
 0x19c   :  { %v605_v6 = vmul.f32 %v271_v4, %v271_v4  ;;  %v568_v7 = vmul.f32 %v497_v5, %v271_v4  ;;  %v649_v8 = vmul.f32 %v497_v5, %v497_v5 }
 0x19e   :  { %v620_v11 = vadd.f32 %v619_v62, %v605_v6  ;;  %v583_v12 = vadd.f32 %v582_v63, %v568_v7  ;;  %v664_v13 = vadd.f32 %v663_v0, %v649_v8 }
 0x1a0   :  { %v621_v14 = vadd.f32 %v620_v11, %v606_v9  ;;  %v584_v15 = vadd.f32 %v583_v12, %v569_v3  ;;  %v665_v16 = vadd.f32 %v664_v13, %v650_v10 }
 0x1a2   :  { %v824_v17 = vpop.f32.mrb[4].mxu0  ;;  %v860_v18 = vpop.f32.mrb[4].mxu1 }
 0x1a3   :  { %v571_v19 = vmul.f32 %v860_v18, %v824_v17  ;;  %v281_v20 = vpop.f32.mrb[5].mxu0  ;;  %v507_v21 = vpop.f32.mrb[5].mxu1  ;;  %v608_v25 = vmul.f32 %v824_v17, %v824_v17  ;;  %v652_v26 = vmul.f32 %v860_v18, %v860_v18 }
 0x1a4   :  { %v607_v22 = vmul.f32 %v281_v20, %v281_v20  ;;  %v570_v23 = vmul.f32 %v507_v21, %v281_v20  ;;  %v651_v24 = vmul.f32 %v507_v21, %v507_v21 }
 0x1a6   :  { %v622_v27 = vadd.f32 %v621_v14, %v607_v22  ;;  %v585_v28 = vadd.f32 %v584_v15, %v570_v23  ;;  %v666_v29 = vadd.f32 %v665_v16, %v651_v24 }
 0x1a8   :  { %v623_v30 = vadd.f32 %v622_v27, %v608_v25  ;;  %v586_v31 = vadd.f32 %v585_v28, %v571_v19  ;;  %v667_v32 = vadd.f32 %v666_v29, %v652_v26 }
 0x1aa   :  { %v827_v33 = vpop.f32.mrb[6].mxu0  ;;  %v863_v34 = vpop.f32.mrb[6].mxu1 }
 0x1ab   :  { %v573_v35 = vmul.f32 %v863_v34, %v827_v33  ;;  %v291_v36 = vpop.f32.mrb[7].mxu0  ;;  %v517_v37 = vpop.f32.mrb[7].mxu1  ;;  %v610_v41 = vmul.f32 %v827_v33, %v827_v33  ;;  %v654_v42 = vmul.f32 %v863_v34, %v863_v34 }
 0x1ac   :  { %v609_v38 = vmul.f32 %v291_v36, %v291_v36  ;;  %v572_v39 = vmul.f32 %v517_v37, %v291_v36  ;;  %v653_v40 = vmul.f32 %v517_v37, %v517_v37 }
 0x1ae   :  { %v624_v43 = vadd.f32 %v623_v30, %v609_v38  ;;  %v587_v44 = vadd.f32 %v586_v31, %v572_v39  ;;  %v668_v45 = vadd.f32 %v667_v32, %v653_v40 }
 0x1b0   :  { %v625_v46 = vadd.f32 %v624_v43, %v610_v41  ;;  %v588_v47 = vadd.f32 %v587_v44, %v573_v35  ;;  %v669_v48 = vadd.f32 %v668_v45, %v654_v42 }
 0x1b2   :  { %v830_v49 = vpop.f32.mrb[8].mxu0  ;;  %v866_v50 = vpop.f32.mrb[8].mxu1 }
 0x1b3   :  { %v575_v51 = vmul.f32 %v866_v50, %v830_v49  ;;  %v301_v52 = vpop.f32.mrb[9].mxu0  ;;  %v527_v53 = vpop.f32.mrb[9].mxu1  ;;  %v612_v57 = vmul.f32 %v830_v49, %v830_v49  ;;  %v656_v58 = vmul.f32 %v866_v50, %v866_v50 }
 0x1b4   :  { %v611_v54 = vmul.f32 %v301_v52, %v301_v52  ;;  %v574_v55 = vmul.f32 %v527_v53, %v301_v52  ;;  %v655_v56 = vmul.f32 %v527_v53, %v527_v53 }
 0x1b6   :  { %v626_v59 = vadd.f32 %v625_v46, %v611_v54  ;;  %v589_v60 = vadd.f32 %v588_v47, %v574_v55  ;;  %v670_v61 = vadd.f32 %v669_v48, %v655_v56 }
 0x1b8   :  { %v627_v62 = vadd.f32 %v626_v59, %v612_v57  ;;  %v590_v63 = vadd.f32 %v589_v60, %v575_v51  ;;  %v671_v0 = vadd.f32 %v670_v61, %v656_v58 }
 0x1ba   :  { %v833_v1 = vpop.f32.mrb[10].mxu0  ;;  %v869_v2 = vpop.f32.mrb[10].mxu1 }
 0x1bb   :  { %v577_v3 = vmul.f32 %v869_v2, %v833_v1  ;;  %v311_v4 = vpop.f32.mrb[11].mxu0  ;;  %v537_v5 = vpop.f32.mrb[11].mxu1  ;;  %v614_v9 = vmul.f32 %v833_v1, %v833_v1  ;;  %v658_v10 = vmul.f32 %v869_v2, %v869_v2 }
 0x1bc   :  { %v613_v6 = vmul.f32 %v311_v4, %v311_v4  ;;  %v576_v7 = vmul.f32 %v537_v5, %v311_v4  ;;  %v657_v8 = vmul.f32 %v537_v5, %v537_v5 }
 0x1be   :  { %v628_v11 = vadd.f32 %v627_v62, %v613_v6  ;;  %v591_v12 = vadd.f32 %v590_v63, %v576_v7  ;;  %v672_v13 = vadd.f32 %v671_v0, %v657_v8 }
 0x1c0   :  { %v629_v14 = vadd.f32 %v628_v11, %v614_v9  ;;  %v592_v15 = vadd.f32 %v591_v12, %v577_v3  ;;  %v673_v16 = vadd.f32 %v672_v13, %v658_v10 }
 0x1c2   :  { %v836_v17 = vpop.f32.mrb[12].mxu0  ;;  %v872_v18 = vpop.f32.mrb[12].mxu1 }
 0x1c3   :  { %v579_v19 = vmul.f32 %v872_v18, %v836_v17  ;;  %v321_v20 = vpop.f32.mrb[13].mxu0  ;;  %v547_v21 = vpop.f32.mrb[13].mxu1  ;;  %v616_v25 = vmul.f32 %v836_v17, %v836_v17  ;;  %v660_v26 = vmul.f32 %v872_v18, %v872_v18 }
 0x1c4   :  { %v615_v22 = vmul.f32 %v321_v20, %v321_v20  ;;  %v578_v23 = vmul.f32 %v547_v21, %v321_v20  ;;  %v659_v24 = vmul.f32 %v547_v21, %v547_v21 }
 0x1c6   :  { %v630_v27 = vadd.f32 %v629_v14, %v615_v22  ;;  %v593_v28 = vadd.f32 %v592_v15, %v578_v23  ;;  %v674_v29 = vadd.f32 %v673_v16, %v659_v24 }
 0x1c8   :  { %v631_v30 = vadd.f32 %v630_v27, %v616_v25  ;;  %v594_v31 = vadd.f32 %v593_v28, %v579_v19  ;;  %v675_v32 = vadd.f32 %v674_v29, %v660_v26 }
 0x1ca   :  { %v839_v33 = vpop.f32.mrb[14].mxu0  ;;  %v875_v34 = vpop.f32.mrb[14].mxu1 }
 0x1cb   :  { %v581_v35 = vmul.f32 %v875_v34, %v839_v33  ;;  %v331_v36 = vpop.f32.mrb[15].mxu0  ;;  %v557_v37 = vpop.f32.mrb[15].mxu1  ;;  %v618_v41 = vmul.f32 %v839_v33, %v839_v33  ;;  %v662_v42 = vmul.f32 %v875_v34, %v875_v34 }
 0x1cc   :  { %v617_v38 = vmul.f32 %v331_v36, %v331_v36  ;;  %v580_v39 = vmul.f32 %v557_v37, %v331_v36  ;;  %v661_v40 = vmul.f32 %v557_v37, %v557_v37 }
 0x1ce   :  { %v632_v43 = vadd.f32 %v631_v30, %v617_v38  ;;  %v595_v44 = vadd.f32 %v594_v31, %v580_v39  ;;  %v676_v45 = vadd.f32 %v675_v32, %v661_v40 }
 0x1d0   :  { %v633_v46 = vadd.f32 %v632_v43, %v618_v41  ;;  %v596_v47 = vadd.f32 %v595_v44, %v581_v35  ;;  %v677_v48 = vadd.f32 %v676_v45, %v662_v42 }
 0x1d2   :  { %v634_v49 = vrot.slane %v633_v46, 4  ;;  %v678_v50 = vrot.slane %v677_v48, 4  ;;  %v597_v61 = vrot.slane %v596_v47, 4 }
 0x1d4   :  { %v635_v51 = vadd.f32 %v634_v49, %v633_v46  ;;  %v679_v52 = vadd.f32 %v678_v50, %v677_v48  ;;  %v598_v1 = vadd.f32 %v597_v61, %v596_v47 }
 0x1d6   :  { %v636_v53 = vrot.slane %v635_v51, 2  ;;  %v680_v54 = vrot.slane %v679_v52, 2  ;;  %v599_v10 = vrot.slane %v598_v1, 2 }
 0x1d8   :  { %v637_v55 = vadd.f32 %v636_v53, %v635_v51  ;;  %v681_v56 = vadd.f32 %v680_v54, %v679_v52  ;;  %v600_v12 = vadd.f32 %v599_v10, %v598_v1 }
 0x1da   :  { %v638_v57 = vrot.slane %v637_v55, 1  ;;  %v682_v58 = vrot.slane %v681_v56, 1  ;;  %v601_v13 = vrot.slane %v600_v12, 1 }
 0x1dc   :  { %v639_v59 = vadd.f32 %v638_v57, %v637_v55  ;;  %v683_v60 = vadd.f32 %v682_v58, %v681_v56  ;;  %v602_v14 = vadd.f32 %v601_v13, %v600_v12 }
 0x1de   :  { %904 = vrsqrt.f32 %v639_v59  ;;  %vm642_vm1 = vcmp.eq.f32.partialorder %v639_v59, inf  ;;  %v645_v2 = vand.u32 2147483648, %v639_v59  ;;  %vm644_vm2 = vcmp.eq.f32.partialorder %v639_v59, 0.0 }
 0x1df   :  { %906 = vrsqrt.f32 %v683_v60  ;;  %vm686_vm3 = vcmp.eq.f32.partialorder %v683_v60, inf  ;;  %v689_v5 = vand.u32 2147483648, %v683_v60  ;;  %vm688_vm4 = vcmp.eq.f32.partialorder %v683_v60, 0.0 }
 0x1e8   :  { %v905_v62 = vpop.eup %904 }
 0x1e9   :  { %v907_v63 = vpop.eup %906  ;;  %v641_v0 = vmul.f32 %v905_v62, %v639_v59 }
 0x1ea   :  { %v685_v3 = vmul.f32 %v907_v63, %v683_v60 }
 0x1eb   :  { %v643_v4 = vsel %vm642_vm1, %v639_v59, %v641_v0 }
 0x1ec   :  { %v646_v6 = vsel %vm644_vm2, %v645_v2, %v643_v4  ;;  %v687_v7 = vsel %vm686_vm3, %v683_v60, %v685_v3 }
 0x1ed   :  { %v690_v8 = vsel %vm688_vm4, %v689_v5, %v687_v7 }
 0x1ee   :  { %v691_v9 = vmul.f32 %v690_v8, %v646_v6 }
 0x1f0   :  { %v692_v11 = vmax.f32 %v691_v9, 1e-08 }
 0x1f2   :  { %908 = vrcp.f32 %v692_v11 }
 0x1fc   :  { %v909_v15 = vpop.eup %908 }
 0x1fd   :  { %v694_v16 = vmul.f32 %v909_v15, %v602_v14 }
 0x1ff   :  { %695 = vst [vmem:[#allocation8] sm:$0x1] %v694_v16 }
 0x200   :  { %987 = shalt.err (!%p984_p0)
}
 0x201   :  { %s988_s6 = scalar_lea.hbm %s1129_s4, 16 }
 0x202   :  { %p989_p1 = scmp.ne.s32.totalorder %s1129_s4, %s988_s6  ;;  %p992_p2 = scmp.lt.u32.totalorder %s988_s6, %s1129_s4 }
 0x204   :  { %p994_p3 = pnand %p992_p2, %p989_p1 }
 0x206   :  { %997 = shalt.err (!%p994_p3)
}
 0x207   :  { %705 = dma.vmem_to_hbm [thread:$0]  %s703_s3, 16, %s1129_s4, [#allocation4]  }
 0x208   :  { %1002 = dma.done.wait [#allocation4], 16  }
 0x209   :  { %1003 = vsyncadd [#allocation4], 4294967280 }
 0x20a   :  { %709 = vsyncpa [#allocation3], 1 }
 0x20b   :  { %710 = vsyncpa [#allocation6], 1 }
 0x20c   :  { %711 = vsyncpa [#allocation4], 1 }

</bundles_post_ra>
